<compile_context>
chip_gen: v6e
topology: v6e:2x2x1
jax: 0.10.0
libtpu: 0.0.40
codegen_flags: <defaults>
</compile_context>

<pallas_src>
import math
import functools

import jax
import jax.numpy as jnp
import numpy as np
from jax import lax
from jax.experimental import pallas as pl
from jax.experimental.pallas import tpu as pltpu


def _mha_kernel(q_ref, k_ref, v_ref,
                wq_ref, bq_ref, wk_ref, bk_ref, wv_ref, bv_ref,
                wo_ref, bo_ref,
                out_ref, attn_ref,
                ctx_scratch,
                *, head_num, d_k, compute_dtype):
    q = q_ref[0]            # [S, D]
    k = k_ref[0]            # [S, D]
    v = v_ref[0]            # [S, D]

    def mm(a, b):
        # MXU matmul with f32 accumulation (operands optionally downcast).
        return jnp.dot(a.astype(compute_dtype), b.astype(compute_dtype),
                       preferred_element_type=jnp.float32)

    scale = jnp.float32(1.0 / math.sqrt(d_k))

    # Full-width projections: one [S,D]x[D,D] matmul each (MXU-dense), bias added once.
    # The attention scale is folded into the Q projection result.
    qh_full = (mm(q, wq_ref[...]) + bq_ref[...]) * scale   # [S, D]
    kh_full = mm(k, wk_ref[...]) + bk_ref[...]             # [S, D]
    vh_full = mm(v, wv_ref[...]) + bv_ref[...]             # [S, D]

    # Per-head attention; head loop is statically unrolled (H known at trace time).
    for h in range(head_num):
        lo = h * d_k
        qh = qh_full[:, lo:lo + d_k]                        # [S, d_k] static lane slice
        kh = kh_full[:, lo:lo + d_k]
        vh = vh_full[:, lo:lo + d_k]

        # scores = qh @ kh^T without materializing a transpose (contract last dims).
        scores = lax.dot_general(
            qh.astype(compute_dtype), kh.astype(compute_dtype),
            dimension_numbers=(((1,), (1,)), ((), ())),
            preferred_element_type=jnp.float32)             # [S, S]

        # Numerically-stable softmax along the key axis (exp -> EUP, reduce -> XLU).
        m = jnp.max(scores, axis=-1, keepdims=True)
        e = jnp.exp(scores - m)
        p = e * pl.reciprocal(jnp.sum(e, axis=-1, keepdims=True), approx=False)

        attn_ref[0, h] = p.astype(attn_ref.dtype)           # attention probabilities

        # This head's context goes into its column slab of the [S, D] scratch.
        ctx_scratch[:, lo:lo + d_k] = jnp.dot(
            p.astype(compute_dtype), vh.astype(compute_dtype),
            preferred_element_type=jnp.float32)

    # Single full-K output projection: [S,D] x [D,D] + bias, written once, lane-dense.
    out_ref[0] = (mm(ctx_scratch[...], wo_ref[...]) + bo_ref[...]).astype(out_ref.dtype)


def multi_headed_attention(query, key, value, params, *, head_num,
                           compute_dtype=jnp.float32):
    """params: dict with wq/wk/wv/wo of shape [D, D] (in, out) and bq/bk/bv/bo of [D]."""
    B, S, D = query.shape
    H = head_num
    assert D % H == 0
    d_k = D // H

    # Biases as (1, D) rows so they broadcast over the [S, D] projections.
    bq = params["bq"].reshape(1, D)
    bk = params["bk"].reshape(1, D)
    bv = params["bv"].reshape(1, D)
    bo = params["bo"].reshape(1, D)

    kernel = functools.partial(_mha_kernel, head_num=H, d_k=d_k,
                               compute_dtype=compute_dtype)

    weight_spec = pl.BlockSpec((D, D), lambda b: (0, 0))    # resident across the grid
    bias_spec = pl.BlockSpec((1, D), lambda b: (0, 0))      # resident across the grid

    out, attn = pl.pallas_call(
        kernel,
        out_shape=(
            jax.ShapeDtypeStruct((B, S, D), jnp.float32),
            jax.ShapeDtypeStruct((B, H, S, S), jnp.float32),
        ),
        grid_spec=pltpu.PrefetchScalarGridSpec(
            num_scalar_prefetch=0,
            grid=(B,),
            in_specs=[
                pl.BlockSpec((1, S, D), lambda b: (b, 0, 0)),   # query
                pl.BlockSpec((1, S, D), lambda b: (b, 0, 0)),   # key
                pl.BlockSpec((1, S, D), lambda b: (b, 0, 0)),   # value
                weight_spec, bias_spec,                          # wq, bq
                weight_spec, bias_spec,                          # wk, bk
                weight_spec, bias_spec,                          # wv, bv
                weight_spec, bias_spec,                          # wo, bo
            ],
            out_specs=[
                pl.BlockSpec((1, S, D), lambda b: (b, 0, 0)),        # attended output
                pl.BlockSpec((1, H, S, S), lambda b: (b, 0, 0, 0)),  # attention probs
            ],
            scratch_shapes=[pltpu.VMEM((S, D), jnp.float32)],        # concatenated ctx
        ),
        compiler_params=pltpu.CompilerParams(
            dimension_semantics=("parallel",),   # batch axis shards across TensorCores
            vmem_limit_bytes=64 << 20,           # headroom for larger S/D tiles
        ),
    )(query, key, value,
      params["wq"], bq, params["wk"], bk, params["wv"], bv, params["wo"], bo)

    return out, attn


def _reference_mha(query, key, value, params, *, head_num):
    """Pure-JAX reference mirroring the PyTorch forward (eval mode, mask=None)."""
    B, S, D = query.shape
    H = head_num
    d_k = D // H

    def lin(x, w, b):
        return x @ w + b

    q = lin(query, params["wq"], params["bq"]).reshape(B, S, H, d_k).transpose(0, 2, 1, 3)
    k = lin(key, params["wk"], params["bk"]).reshape(B, S, H, d_k).transpose(0, 2, 1, 3)
    v = lin(value, params["wv"], params["bv"]).reshape(B, S, H, d_k).transpose(0, 2, 1, 3)

    scores = jnp.einsum("bhqd,bhkd->bhqk", q, k) / math.sqrt(d_k)
    p = jax.nn.softmax(scores, axis=-1)
    ctx = jnp.einsum("bhqk,bhkd->bhqd", p, v)
    ctx = ctx.transpose(0, 2, 1, 3).reshape(B, S, D)
    out = lin(ctx, params["wo"], params["bo"])
    return out, p


if __name__ == "__main__":
    B, S, D, H = 2, 8, 32, 4

    key0 = jax.random.PRNGKey(0)
    keys = jax.random.split(key0, 12)

    # Deterministic synthetic parameters (Linear weights stored as [in, out]).
    scale = 1.0 / math.sqrt(D)
    params = {
        "wq": jax.random.uniform(keys[0], (D, D), jnp.float32, -scale, scale),
        "bq": jax.random.uniform(keys[1], (D,), jnp.float32, -scale, scale),
        "wk": jax.random.uniform(keys[2], (D, D), jnp.float32, -scale, scale),
        "bk": jax.random.uniform(keys[3], (D,), jnp.float32, -scale, scale),
        "wv": jax.random.uniform(keys[4], (D, D), jnp.float32, -scale, scale),
        "bv": jax.random.uniform(keys[5], (D,), jnp.float32, -scale, scale),
        "wo": jax.random.uniform(keys[6], (D, D), jnp.float32, -scale, scale),
        "bo": jax.random.uniform(keys[7], (D,), jnp.float32, -scale, scale),
    }

    query = jax.random.normal(keys[8], (B, S, D), jnp.float32)
    key_in = jax.random.normal(keys[9], (B, S, D), jnp.float32)
    value = jax.random.normal(keys[10], (B, S, D), jnp.float32)

    out, attn = multi_headed_attention(query, key_in, value, params, head_num=H)
    out = jax.block_until_ready(out)
    attn = jax.block_until_ready(attn)

    ref_out, ref_attn = _reference_mha(query, key_in, value, params, head_num=H)

    np.testing.assert_allclose(np.asarray(out), np.asarray(ref_out), rtol=1e-5, atol=1e-5)
    np.testing.assert_allclose(np.asarray(attn), np.asarray(ref_attn), rtol=1e-5, atol=1e-5)

    print("KERNEL_OK")
</pallas_src>

<mosaic_0001>
module attributes {stable_mosaic.version = 11 : i64} {
  func.func @_mha_kernel(%arg0: i32, %arg1: memref<1x8x32xf32, #tpu.memory_space<vmem>>, %arg2: memref<1x8x32xf32, #tpu.memory_space<vmem>>, %arg3: memref<1x8x32xf32, #tpu.memory_space<vmem>>, %arg4: memref<32x32xf32, #tpu.memory_space<vmem>>, %arg5: memref<1x32xf32, #tpu.memory_space<vmem>>, %arg6: memref<32x32xf32, #tpu.memory_space<vmem>>, %arg7: memref<1x32xf32, #tpu.memory_space<vmem>>, %arg8: memref<32x32xf32, #tpu.memory_space<vmem>>, %arg9: memref<1x32xf32, #tpu.memory_space<vmem>>, %arg10: memref<32x32xf32, #tpu.memory_space<vmem>>, %arg11: memref<1x32xf32, #tpu.memory_space<vmem>>, %arg12: memref<1x8x32xf32, #tpu.memory_space<vmem>>, %arg13: memref<1x4x8x8xf32, #tpu.memory_space<vmem>>, %arg14: memref<8x32xf32, #tpu.memory_space<vmem>>) attributes {dimension_semantics = [#tpu.dimension_semantics<parallel>], iteration_bounds = array<i64: 2>, scalar_prefetch = 0 : i64, scratch_operands = 1 : i64, tpu.core_type = #tpu.core_type<tc>, window_params = [{transform_indices = @transform_0, window_bounds = array<i64: 1, 8, 32>}, {transform_indices = @transform_1, window_bounds = array<i64: 1, 8, 32>}, {transform_indices = @transform_2, window_bounds = array<i64: 1, 8, 32>}, {pipeline_mode = #tpu.pipeline_mode<synchronous>, transform_indices = @transform_3, window_bounds = array<i64: 32, 32>}, {pipeline_mode = #tpu.pipeline_mode<synchronous>, transform_indices = @transform_4, window_bounds = array<i64: 1, 32>}, {pipeline_mode = #tpu.pipeline_mode<synchronous>, transform_indices = @transform_5, window_bounds = array<i64: 32, 32>}, {pipeline_mode = #tpu.pipeline_mode<synchronous>, transform_indices = @transform_6, window_bounds = array<i64: 1, 32>}, {pipeline_mode = #tpu.pipeline_mode<synchronous>, transform_indices = @transform_7, window_bounds = array<i64: 32, 32>}, {pipeline_mode = #tpu.pipeline_mode<synchronous>, transform_indices = @transform_8, window_bounds = array<i64: 1, 32>}, {pipeline_mode = #tpu.pipeline_mode<synchronous>, transform_indices = @transform_9, window_bounds = array<i64: 32, 32>}, {pipeline_mode = #tpu.pipeline_mode<synchronous>, transform_indices = @transform_10, window_bounds = array<i64: 1, 32>}, {transform_indices = @transform_11, window_bounds = array<i64: 1, 8, 32>}, {transform_indices = @transform_12, window_bounds = array<i64: 1, 4, 8, 8>}]} {
    %c0 = arith.constant 0 : index
    %c0_0 = arith.constant 0 : index
    %c0_1 = arith.constant 0 : index
    %0 = vector.load %arg1[%c0, %c0_0, %c0_1] : memref<1x8x32xf32, #tpu.memory_space<vmem>>, vector<1x8x32xf32>
    %1 = vector.shape_cast %0 : vector<1x8x32xf32> to vector<8x32xf32>
    %c0_2 = arith.constant 0 : index
    %c0_3 = arith.constant 0 : index
    %c0_4 = arith.constant 0 : index
    %2 = vector.load %arg2[%c0_2, %c0_3, %c0_4] : memref<1x8x32xf32, #tpu.memory_space<vmem>>, vector<1x8x32xf32>
    %3 = vector.shape_cast %2 : vector<1x8x32xf32> to vector<8x32xf32>
    %c0_5 = arith.constant 0 : index
    %c0_6 = arith.constant 0 : index
    %c0_7 = arith.constant 0 : index
    %4 = vector.load %arg3[%c0_5, %c0_6, %c0_7] : memref<1x8x32xf32, #tpu.memory_space<vmem>>, vector<1x8x32xf32>
    %5 = vector.shape_cast %4 : vector<1x8x32xf32> to vector<8x32xf32>
    %c0_8 = arith.constant 0 : index
    %c0_9 = arith.constant 0 : index
    %6 = vector.load %arg4[%c0_8, %c0_9] : memref<32x32xf32, #tpu.memory_space<vmem>>, vector<32x32xf32>
    %cst = arith.constant dense<0.000000e+00> : vector<8x32xf32>
    %7 = tpu.matmul %1, %6, %cst {dimension_numbers = #tpu.dot_dimension_numbers<[1], [0], [0], [1], [0, 0, 1, 1], [], []>} : vector<8x32xf32>, vector<32x32xf32>, vector<8x32xf32> -> vector<8x32xf32>
    %c0_10 = arith.constant 0 : index
    %c0_11 = arith.constant 0 : index
    %8 = vector.load %arg5[%c0_10, %c0_11] : memref<1x32xf32, #tpu.memory_space<vmem>>, vector<1x32xf32>
    %9 = vector.broadcast %8 : vector<1x32xf32> to vector<8x32xf32>
    %10 = arith.addf %7, %9 : vector<8x32xf32>
    %cst_12 = arith.constant 0.353553385 : f32
    %11 = vector.broadcast %cst_12 : f32 to vector<8x32xf32>
    %12 = arith.mulf %10, %11 : vector<8x32xf32>
    %c0_13 = arith.constant 0 : index
    %c0_14 = arith.constant 0 : index
    %13 = vector.load %arg6[%c0_13, %c0_14] : memref<32x32xf32, #tpu.memory_space<vmem>>, vector<32x32xf32>
    %cst_15 = arith.constant dense<0.000000e+00> : vector<8x32xf32>
    %14 = tpu.matmul %3, %13, %cst_15 {dimension_numbers = #tpu.dot_dimension_numbers<[1], [0], [0], [1], [0, 0, 1, 1], [], []>} : vector<8x32xf32>, vector<32x32xf32>, vector<8x32xf32> -> vector<8x32xf32>
    %c0_16 = arith.constant 0 : index
    %c0_17 = arith.constant 0 : index
    %15 = vector.load %arg7[%c0_16, %c0_17] : memref<1x32xf32, #tpu.memory_space<vmem>>, vector<1x32xf32>
    %16 = vector.broadcast %15 : vector<1x32xf32> to vector<8x32xf32>
    %17 = arith.addf %14, %16 : vector<8x32xf32>
    %c0_18 = arith.constant 0 : index
    %c0_19 = arith.constant 0 : index
    %18 = vector.load %arg8[%c0_18, %c0_19] : memref<32x32xf32, #tpu.memory_space<vmem>>, vector<32x32xf32>
    %cst_20 = arith.constant dense<0.000000e+00> : vector<8x32xf32>
    %19 = tpu.matmul %5, %18, %cst_20 {dimension_numbers = #tpu.dot_dimension_numbers<[1], [0], [0], [1], [0, 0, 1, 1], [], []>} : vector<8x32xf32>, vector<32x32xf32>, vector<8x32xf32> -> vector<8x32xf32>
    %c0_21 = arith.constant 0 : index
    %c0_22 = arith.constant 0 : index
    %20 = vector.load %arg9[%c0_21, %c0_22] : memref<1x32xf32, #tpu.memory_space<vmem>>, vector<1x32xf32>
    %21 = vector.broadcast %20 : vector<1x32xf32> to vector<8x32xf32>
    %22 = arith.addf %19, %21 : vector<8x32xf32>
    %23 = vector.extract_strided_slice %12 {offsets = [0, 0], sizes = [8, 8], strides = [1, 1]} : vector<8x32xf32> to vector<8x8xf32>
    %24 = vector.extract_strided_slice %17 {offsets = [0, 0], sizes = [8, 8], strides = [1, 1]} : vector<8x32xf32> to vector<8x8xf32>
    %25 = vector.extract_strided_slice %22 {offsets = [0, 0], sizes = [8, 8], strides = [1, 1]} : vector<8x32xf32> to vector<8x8xf32>
    %cst_23 = arith.constant dense<0.000000e+00> : vector<8x8xf32>
    %26 = tpu.matmul %23, %24, %cst_23 {dimension_numbers = #tpu.dot_dimension_numbers<[1], [1], [0], [0], [0, 0, 1, 0], [], []>} : vector<8x8xf32>, vector<8x8xf32>, vector<8x8xf32> -> vector<8x8xf32>
    %cst_24 = arith.constant dense<0xFF800000> : vector<8xf32>
    %27 = vector.multi_reduction <maximumf>, %26, %cst_24 [1] : vector<8x8xf32> to vector<8xf32>
    %28 = vector.shape_cast %27 : vector<8xf32> to vector<8x1xf32>
    %29 = vector.broadcast %28 : vector<8x1xf32> to vector<8x8xf32>
    %30 = arith.subf %26, %29 : vector<8x8xf32>
    %31 = math.exp %30 : vector<8x8xf32>
    %cst_25 = arith.constant dense<0.000000e+00> : vector<8xf32>
    %32 = vector.multi_reduction <add>, %31, %cst_25 [1] : vector<8x8xf32> to vector<8xf32>
    %33 = vector.shape_cast %32 : vector<8xf32> to vector<8x1xf32>
    %34 = tpu.reciprocal %33 : vector<8x1xf32> -> vector<8x1xf32>
    %35 = vector.broadcast %34 : vector<8x1xf32> to vector<8x8xf32>
    %36 = arith.mulf %31, %35 : vector<8x8xf32>
    %c0_26 = arith.constant 0 : index
    %c0_27 = arith.constant 0 : index
    %c0_28 = arith.constant 0 : index
    %c0_29 = arith.constant 0 : index
    %37 = vector.load %arg13[%c0_26, %c0_27, %c0_28, %c0_29] : memref<1x4x8x8xf32, #tpu.memory_space<vmem>>, vector<1x1x8x8xf32>
    %38 = vector.shape_cast %37 : vector<1x1x8x8xf32> to vector<8x8xf32>
    %39 = vector.shape_cast %36 : vector<8x8xf32> to vector<1x1x8x8xf32>
    tpu.vector_store %arg13[%c0_26, %c0_27, %c0_28, %c0_29], %39 {strides = array<i32>} : memref<1x4x8x8xf32, #tpu.memory_space<vmem>>, vector<1x1x8x8xf32>,
    %cst_30 = arith.constant dense<0.000000e+00> : vector<8x8xf32>
    %40 = tpu.matmul %36, %25, %cst_30 {dimension_numbers = #tpu.dot_dimension_numbers<[1], [0], [0], [1], [0, 0, 1, 1], [], []>} : vector<8x8xf32>, vector<8x8xf32>, vector<8x8xf32> -> vector<8x8xf32>
    %c0_31 = arith.constant 0 : index
    %c0_32 = arith.constant 0 : index
    %41 = vector.load %arg14[%c0_31, %c0_32] : memref<8x32xf32, #tpu.memory_space<vmem>>, vector<8x8xf32>
    tpu.vector_store %arg14[%c0_31, %c0_32], %40 {strides = array<i32>} : memref<8x32xf32, #tpu.memory_space<vmem>>, vector<8x8xf32>,
    %42 = vector.extract_strided_slice %12 {offsets = [0, 8], sizes = [8, 8], strides = [1, 1]} : vector<8x32xf32> to vector<8x8xf32>
    %43 = vector.extract_strided_slice %17 {offsets = [0, 8], sizes = [8, 8], strides = [1, 1]} : vector<8x32xf32> to vector<8x8xf32>
    %44 = vector.extract_strided_slice %22 {offsets = [0, 8], sizes = [8, 8], strides = [1, 1]} : vector<8x32xf32> to vector<8x8xf32>
    %cst_33 = arith.constant dense<0.000000e+00> : vector<8x8xf32>
    %45 = tpu.matmul %42, %43, %cst_33 {dimension_numbers = #tpu.dot_dimension_numbers<[1], [1], [0], [0], [0, 0, 1, 0], [], []>} : vector<8x8xf32>, vector<8x8xf32>, vector<8x8xf32> -> vector<8x8xf32>
    %cst_34 = arith.constant dense<0xFF800000> : vector<8xf32>
    %46 = vector.multi_reduction <maximumf>, %45, %cst_34 [1] : vector<8x8xf32> to vector<8xf32>
    %47 = vector.shape_cast %46 : vector<8xf32> to vector<8x1xf32>
    %48 = vector.broadcast %47 : vector<8x1xf32> to vector<8x8xf32>
    %49 = arith.subf %45, %48 : vector<8x8xf32>
    %50 = math.exp %49 : vector<8x8xf32>
    %cst_35 = arith.constant dense<0.000000e+00> : vector<8xf32>
    %51 = vector.multi_reduction <add>, %50, %cst_35 [1] : vector<8x8xf32> to vector<8xf32>
    %52 = vector.shape_cast %51 : vector<8xf32> to vector<8x1xf32>
    %53 = tpu.reciprocal %52 : vector<8x1xf32> -> vector<8x1xf32>
    %54 = vector.broadcast %53 : vector<8x1xf32> to vector<8x8xf32>
    %55 = arith.mulf %50, %54 : vector<8x8xf32>
    %c0_36 = arith.constant 0 : index
    %c1 = arith.constant 1 : index
    %c0_37 = arith.constant 0 : index
    %c0_38 = arith.constant 0 : index
    %56 = vector.load %arg13[%c0_36, %c1, %c0_37, %c0_38] : memref<1x4x8x8xf32, #tpu.memory_space<vmem>>, vector<1x1x8x8xf32>
    %57 = vector.shape_cast %56 : vector<1x1x8x8xf32> to vector<8x8xf32>
    %58 = vector.shape_cast %55 : vector<8x8xf32> to vector<1x1x8x8xf32>
    tpu.vector_store %arg13[%c0_36, %c1, %c0_37, %c0_38], %58 {strides = array<i32>} : memref<1x4x8x8xf32, #tpu.memory_space<vmem>>, vector<1x1x8x8xf32>,
    %cst_39 = arith.constant dense<0.000000e+00> : vector<8x8xf32>
    %59 = tpu.matmul %55, %44, %cst_39 {dimension_numbers = #tpu.dot_dimension_numbers<[1], [0], [0], [1], [0, 0, 1, 1], [], []>} : vector<8x8xf32>, vector<8x8xf32>, vector<8x8xf32> -> vector<8x8xf32>
    %c0_40 = arith.constant 0 : index
    %c8 = arith.constant 8 : index
    %60 = vector.load %arg14[%c0_40, %c8] : memref<8x32xf32, #tpu.memory_space<vmem>>, vector<8x8xf32>
    tpu.vector_store %arg14[%c0_40, %c8], %59 {strides = array<i32>} : memref<8x32xf32, #tpu.memory_space<vmem>>, vector<8x8xf32>,
    %61 = vector.extract_strided_slice %12 {offsets = [0, 16], sizes = [8, 8], strides = [1, 1]} : vector<8x32xf32> to vector<8x8xf32>
    %62 = vector.extract_strided_slice %17 {offsets = [0, 16], sizes = [8, 8], strides = [1, 1]} : vector<8x32xf32> to vector<8x8xf32>
    %63 = vector.extract_strided_slice %22 {offsets = [0, 16], sizes = [8, 8], strides = [1, 1]} : vector<8x32xf32> to vector<8x8xf32>
    %cst_41 = arith.constant dense<0.000000e+00> : vector<8x8xf32>
    %64 = tpu.matmul %61, %62, %cst_41 {dimension_numbers = #tpu.dot_dimension_numbers<[1], [1], [0], [0], [0, 0, 1, 0], [], []>} : vector<8x8xf32>, vector<8x8xf32>, vector<8x8xf32> -> vector<8x8xf32>
    %cst_42 = arith.constant dense<0xFF800000> : vector<8xf32>
    %65 = vector.multi_reduction <maximumf>, %64, %cst_42 [1] : vector<8x8xf32> to vector<8xf32>
    %66 = vector.shape_cast %65 : vector<8xf32> to vector<8x1xf32>
    %67 = vector.broadcast %66 : vector<8x1xf32> to vector<8x8xf32>
    %68 = arith.subf %64, %67 : vector<8x8xf32>
    %69 = math.exp %68 : vector<8x8xf32>
    %cst_43 = arith.constant dense<0.000000e+00> : vector<8xf32>
    %70 = vector.multi_reduction <add>, %69, %cst_43 [1] : vector<8x8xf32> to vector<8xf32>
    %71 = vector.shape_cast %70 : vector<8xf32> to vector<8x1xf32>
    %72 = tpu.reciprocal %71 : vector<8x1xf32> -> vector<8x1xf32>
    %73 = vector.broadcast %72 : vector<8x1xf32> to vector<8x8xf32>
    %74 = arith.mulf %69, %73 : vector<8x8xf32>
    %c0_44 = arith.constant 0 : index
    %c2 = arith.constant 2 : index
    %c0_45 = arith.constant 0 : index
    %c0_46 = arith.constant 0 : index
    %75 = vector.load %arg13[%c0_44, %c2, %c0_45, %c0_46] : memref<1x4x8x8xf32, #tpu.memory_space<vmem>>, vector<1x1x8x8xf32>
    %76 = vector.shape_cast %75 : vector<1x1x8x8xf32> to vector<8x8xf32>
    %77 = vector.shape_cast %74 : vector<8x8xf32> to vector<1x1x8x8xf32>
    tpu.vector_store %arg13[%c0_44, %c2, %c0_45, %c0_46], %77 {strides = array<i32>} : memref<1x4x8x8xf32, #tpu.memory_space<vmem>>, vector<1x1x8x8xf32>,
    %cst_47 = arith.constant dense<0.000000e+00> : vector<8x8xf32>
    %78 = tpu.matmul %74, %63, %cst_47 {dimension_numbers = #tpu.dot_dimension_numbers<[1], [0], [0], [1], [0, 0, 1, 1], [], []>} : vector<8x8xf32>, vector<8x8xf32>, vector<8x8xf32> -> vector<8x8xf32>
    %c0_48 = arith.constant 0 : index
    %c16 = arith.constant 16 : index
    %79 = vector.load %arg14[%c0_48, %c16] : memref<8x32xf32, #tpu.memory_space<vmem>>, vector<8x8xf32>
    tpu.vector_store %arg14[%c0_48, %c16], %78 {strides = array<i32>} : memref<8x32xf32, #tpu.memory_space<vmem>>, vector<8x8xf32>,
    %80 = vector.extract_strided_slice %12 {offsets = [0, 24], sizes = [8, 8], strides = [1, 1]} : vector<8x32xf32> to vector<8x8xf32>
    %81 = vector.extract_strided_slice %17 {offsets = [0, 24], sizes = [8, 8], strides = [1, 1]} : vector<8x32xf32> to vector<8x8xf32>
    %82 = vector.extract_strided_slice %22 {offsets = [0, 24], sizes = [8, 8], strides = [1, 1]} : vector<8x32xf32> to vector<8x8xf32>
    %cst_49 = arith.constant dense<0.000000e+00> : vector<8x8xf32>
    %83 = tpu.matmul %80, %81, %cst_49 {dimension_numbers = #tpu.dot_dimension_numbers<[1], [1], [0], [0], [0, 0, 1, 0], [], []>} : vector<8x8xf32>, vector<8x8xf32>, vector<8x8xf32> -> vector<8x8xf32>
    %cst_50 = arith.constant dense<0xFF800000> : vector<8xf32>
    %84 = vector.multi_reduction <maximumf>, %83, %cst_50 [1] : vector<8x8xf32> to vector<8xf32>
    %85 = vector.shape_cast %84 : vector<8xf32> to vector<8x1xf32>
    %86 = vector.broadcast %85 : vector<8x1xf32> to vector<8x8xf32>
    %87 = arith.subf %83, %86 : vector<8x8xf32>
    %88 = math.exp %87 : vector<8x8xf32>
    %cst_51 = arith.constant dense<0.000000e+00> : vector<8xf32>
    %89 = vector.multi_reduction <add>, %88, %cst_51 [1] : vector<8x8xf32> to vector<8xf32>
    %90 = vector.shape_cast %89 : vector<8xf32> to vector<8x1xf32>
    %91 = tpu.reciprocal %90 : vector<8x1xf32> -> vector<8x1xf32>
    %92 = vector.broadcast %91 : vector<8x1xf32> to vector<8x8xf32>
    %93 = arith.mulf %88, %92 : vector<8x8xf32>
    %c0_52 = arith.constant 0 : index
    %c3 = arith.constant 3 : index
    %c0_53 = arith.constant 0 : index
    %c0_54 = arith.constant 0 : index
    %94 = vector.load %arg13[%c0_52, %c3, %c0_53, %c0_54] : memref<1x4x8x8xf32, #tpu.memory_space<vmem>>, vector<1x1x8x8xf32>
    %95 = vector.shape_cast %94 : vector<1x1x8x8xf32> to vector<8x8xf32>
    %96 = vector.shape_cast %93 : vector<8x8xf32> to vector<1x1x8x8xf32>
    tpu.vector_store %arg13[%c0_52, %c3, %c0_53, %c0_54], %96 {strides = array<i32>} : memref<1x4x8x8xf32, #tpu.memory_space<vmem>>, vector<1x1x8x8xf32>,
    %cst_55 = arith.constant dense<0.000000e+00> : vector<8x8xf32>
    %97 = tpu.matmul %93, %82, %cst_55 {dimension_numbers = #tpu.dot_dimension_numbers<[1], [0], [0], [1], [0, 0, 1, 1], [], []>} : vector<8x8xf32>, vector<8x8xf32>, vector<8x8xf32> -> vector<8x8xf32>
    %c0_56 = arith.constant 0 : index
    %c24 = arith.constant 24 : index
    %98 = vector.load %arg14[%c0_56, %c24] : memref<8x32xf32, #tpu.memory_space<vmem>>, vector<8x8xf32>
    tpu.vector_store %arg14[%c0_56, %c24], %97 {strides = array<i32>} : memref<8x32xf32, #tpu.memory_space<vmem>>, vector<8x8xf32>,
    %c0_57 = arith.constant 0 : index
    %c0_58 = arith.constant 0 : index
    %99 = vector.load %arg14[%c0_57, %c0_58] : memref<8x32xf32, #tpu.memory_space<vmem>>, vector<8x32xf32>
    %c0_59 = arith.constant 0 : index
    %c0_60 = arith.constant 0 : index
    %100 = vector.load %arg10[%c0_59, %c0_60] : memref<32x32xf32, #tpu.memory_space<vmem>>, vector<32x32xf32>
    %cst_61 = arith.constant dense<0.000000e+00> : vector<8x32xf32>
    %101 = tpu.matmul %99, %100, %cst_61 {dimension_numbers = #tpu.dot_dimension_numbers<[1], [0], [0], [1], [0, 0, 1, 1], [], []>} : vector<8x32xf32>, vector<32x32xf32>, vector<8x32xf32> -> vector<8x32xf32>
    %c0_62 = arith.constant 0 : index
    %c0_63 = arith.constant 0 : index
    %102 = vector.load %arg11[%c0_62, %c0_63] : memref<1x32xf32, #tpu.memory_space<vmem>>, vector<1x32xf32>
    %103 = vector.broadcast %102 : vector<1x32xf32> to vector<8x32xf32>
    %104 = arith.addf %101, %103 : vector<8x32xf32>
    %c0_64 = arith.constant 0 : index
    %c0_65 = arith.constant 0 : index
    %c0_66 = arith.constant 0 : index
    %105 = vector.load %arg12[%c0_64, %c0_65, %c0_66] : memref<1x8x32xf32, #tpu.memory_space<vmem>>, vector<1x8x32xf32>
    %106 = vector.shape_cast %105 : vector<1x8x32xf32> to vector<8x32xf32>
    %107 = vector.shape_cast %104 : vector<8x32xf32> to vector<1x8x32xf32>
    tpu.vector_store %arg12[%c0_64, %c0_65, %c0_66], %107 {strides = array<i32>} : memref<1x8x32xf32, #tpu.memory_space<vmem>>, vector<1x8x32xf32>,
    return
  }
  func.func @transform_0(%arg0: i32) -> (i32, i32, i32) {
    %c0_i32 = arith.constant 0 : i32
    %c0_i32_0 = arith.constant 0 : i32
    %c0_i32_1 = arith.constant 0 : i32
    return %arg0, %c0_i32, %c0_i32_0 : i32, i32, i32
  }
  func.func @transform_1(%arg0: i32) -> (i32, i32, i32) {
    %c0_i32 = arith.constant 0 : i32
    %c0_i32_0 = arith.constant 0 : i32
    %c0_i32_1 = arith.constant 0 : i32
    return %arg0, %c0_i32, %c0_i32_0 : i32, i32, i32
  }
  func.func @transform_2(%arg0: i32) -> (i32, i32, i32) {
    %c0_i32 = arith.constant 0 : i32
    %c0_i32_0 = arith.constant 0 : i32
    %c0_i32_1 = arith.constant 0 : i32
    return %arg0, %c0_i32, %c0_i32_0 : i32, i32, i32
  }
  func.func @transform_3(%arg0: i32) -> (i32, i32) {
    %c0_i32 = arith.constant 0 : i32
    %c0_i32_0 = arith.constant 0 : i32
    %c0_i32_1 = arith.constant 0 : i32
    return %c0_i32, %c0_i32_0 : i32, i32
  }
  func.func @transform_4(%arg0: i32) -> (i32, i32) {
    %c0_i32 = arith.constant 0 : i32
    %c0_i32_0 = arith.constant 0 : i32
    %c0_i32_1 = arith.constant 0 : i32
    return %c0_i32, %c0_i32_0 : i32, i32
  }
  func.func @transform_5(%arg0: i32) -> (i32, i32) {
    %c0_i32 = arith.constant 0 : i32
    %c0_i32_0 = arith.constant 0 : i32
    %c0_i32_1 = arith.constant 0 : i32
    return %c0_i32, %c0_i32_0 : i32, i32
  }
  func.func @transform_6(%arg0: i32) -> (i32, i32) {
    %c0_i32 = arith.constant 0 : i32
    %c0_i32_0 = arith.constant 0 : i32
    %c0_i32_1 = arith.constant 0 : i32
    return %c0_i32, %c0_i32_0 : i32, i32
  }
  func.func @transform_7(%arg0: i32) -> (i32, i32) {
    %c0_i32 = arith.constant 0 : i32
    %c0_i32_0 = arith.constant 0 : i32
    %c0_i32_1 = arith.constant 0 : i32
    return %c0_i32, %c0_i32_0 : i32, i32
  }
  func.func @transform_8(%arg0: i32) -> (i32, i32) {
    %c0_i32 = arith.constant 0 : i32
    %c0_i32_0 = arith.constant 0 : i32
    %c0_i32_1 = arith.constant 0 : i32
    return %c0_i32, %c0_i32_0 : i32, i32
  }
  func.func @transform_9(%arg0: i32) -> (i32, i32) {
    %c0_i32 = arith.constant 0 : i32
    %c0_i32_0 = arith.constant 0 : i32
    %c0_i32_1 = arith.constant 0 : i32
    return %c0_i32, %c0_i32_0 : i32, i32
  }
  func.func @transform_10(%arg0: i32) -> (i32, i32) {
    %c0_i32 = arith.constant 0 : i32
    %c0_i32_0 = arith.constant 0 : i32
    %c0_i32_1 = arith.constant 0 : i32
    return %c0_i32, %c0_i32_0 : i32, i32
  }
  func.func @transform_11(%arg0: i32) -> (i32, i32, i32) {
    %c0_i32 = arith.constant 0 : i32
    %c0_i32_0 = arith.constant 0 : i32
    %c0_i32_1 = arith.constant 0 : i32
    return %arg0, %c0_i32, %c0_i32_0 : i32, i32, i32
  }
  func.func @transform_12(%arg0: i32) -> (i32, i32, i32, i32) {
    %c0_i32 = arith.constant 0 : i32
    %c0_i32_0 = arith.constant 0 : i32
    %c0_i32_1 = arith.constant 0 : i32
    %c0_i32_2 = arith.constant 0 : i32
    return %arg0, %c0_i32, %c0_i32_0, %c0_i32_1 : i32, i32, i32, i32
  }
}

</mosaic_0001>

<bundles_post_ra>
// kernel: tpu_custom_call.1
= control target key start
LH: loop header
LB: loop body
LE: loop exit
PB: predicated region body
PF: predicated region fallthrough
CT: control target
= control target key end

     0   :  { %s2930_s0 = inlined_call_operand.hbm [shape: f32[2,8,32], index: 0, kind: input, shape index: {}]   ;;  %s2931_s1 = inlined_call_operand.hbm [shape: f32[2,8,32], index: 1, kind: input, shape index: {}]   ;;  %s2932_s2 = inlined_call_operand.hbm [shape: f32[2,8,32], index: 2, kind: input, shape index: {}]   ;;  %s2933_s3 = inlined_call_operand.hbm [shape: f32[32,32], index: 3, kind: input, shape index: {}]   ;;  %s2934_s4 = inlined_call_operand.vmem [shape: f32[1,32], index: 4, kind: input, shape index: {}]   ;;  %s2935_s5 = inlined_call_operand.hbm [shape: f32[32,32], index: 5, kind: input, shape index: {}]   ;;  %s2936_s6 = inlined_call_operand.vmem [shape: f32[1,32], index: 6, kind: input, shape index: {}]   ;;  %s2937_s7 = inlined_call_operand.hbm [shape: f32[32,32], index: 7, kind: input, shape index: {}]   ;;  %s2938_s8 = inlined_call_operand.vmem [shape: f32[1,32], index: 8, kind: input, shape index: {}]   ;;  %s2939_s9 = inlined_call_operand.hbm [shape: f32[32,32], index: 9, kind: input, shape index: {}]   ;;  %s2940_s10 = inlined_call_operand.vmem [shape: f32[1,32], index: 10, kind: input, shape index: {}]   ;;  %s2941_s11 = inlined_call_operand.hbm [shape: f32[2,8,32], index: 11, kind: output, shape index: {0}]   ;;  %s2942_s12 = inlined_call_operand.hbm [shape: f32[2,4,8,8], index: 12, kind: output, shape index: {1}]  }
   0x1   :  { %2964 = sst [smem:[#allocation29_spill]] %s2930_s0 }
   0x2   :  { %2965 = sst [smem:[#allocation30_spill]] %s2931_s1 }
   0x3   :  { %2966 = sst [smem:[#allocation31_spill]] %s2933_s3 }
   0x4   :  { %2967 = sst [smem:[#allocation32_spill]] %s2937_s7 }
   0x5   :  { %2968 = sst [smem:[#allocation33_spill]] %s2940_s10 }
   0x6   :  { %2969 = sst [smem:[#allocation34_spill]] %s2941_s11 }
   0x7   :  { %2970 = sst [smem:[#allocation35_spill]] %s2942_s12 }
   0x8   :  { %18 = vsyncpa [#allocation4], 0 }
   0x9   :  { %20 = vsyncpa [#allocation4 + $0x1], 0 }
   0xa   :  { %21 = vsyncpa [#allocation7], 0 }
   0xb   :  { %23 = vsyncpa [#allocation7 + $0x1], 0 }
   0xc   :  { %24 = vsyncpa [#allocation10], 0 }
   0xd   :  { %25 = vsyncpa [#allocation13], 0 }
   0xe   :  { %26 = vsyncpa [#allocation5], 0 }
   0xf   :  { %28 = vsyncpa [#allocation5 + $0x1], 0 }
  0x10   :  { %29 = vsyncpa [#allocation17], 0 }
  0x11   :  { %31 = vsyncpa [#allocation17 + $0x1], 0  ;;  %s2497_s21 = smov 0   ;;  %s2499_s22 = smov 0  }
  0x12   :  { %s2501_s23 = smov 0   ;;  %s2503_s24 = smov 0  }
  0x13 LB: > { %2971 = sst [smem:[#allocation24_spill]] %s2398_s21  ;;  %s2412_s25 = smov [#allocation9]   ;;  %s2410_s24 = sphi %s2503_s24, %s3009_s24   ;;  %s2406_s23 = sphi %s2501_s23, %s3013_s23   ;;  %s2402_s22 = sphi %s2499_s22, %s3012_s22   ;;  %s2398_s21 = sphi %s2497_s21, %s3011_s21  }
  0x14   : > { %2972 = sst [smem:[#allocation25_spill]] %s2410_s24  ;;  %s352_s26 = sshll.u32 %s2412_s25, 4  ;;  %s353_s26 = int_to_ptr.vmem [resolvable:$true] %s352_s26 }
  0x15   : > { %s2518_s27 = sadd.s32 4294967295, %s2410_s24   ;;  %p1814_p0 = scmp.ge.s32.totalorder %s2410_s24, 1 }
  0x16   : > { %p2956_p1 = scmp.eq.s32.totalorder %s2518_s27, 0  ;;  %p340_p2 = scmp.lt.s32.totalorder %s2410_s24, 3 }
  0x17   : > { %s2413_s29 = smov [#allocation12]   ;;  %s2127_s14 = scalar_lea.vmem %s353_s26, 512 }
  0x18   : > { %p2523_p3 = pnand %p1814_p0, %p340_p2  ;;  %s384_s30 = sshll.u32 %s2413_s29, 4  ;;  %s385_s30 = int_to_ptr.vmem [resolvable:$true] %s384_s30 }
  0x19   : > { %p2128_p8 = scmp.ne.s32.totalorder %s353_s26, %s2127_s14  ;;  %p2135_p11 = scmp.lt.s32.totalorder %s353_s26, %s353_s26 }
  0x1a   : > { %s2973_s28 = scalar_select %p2523_p3, 1, 0 }
  0x1b   : > { %p2013_p5 = pneg %p2523_p3  ;;  %p2136_p12 = scmp.lt.s32.totalorder %s2127_s14, %s2127_s14 }
  0x1d   : > { %p2532_p6 = pnand %p2013_p5, %p2956_p1  ;;  %p2137_p13 = por %p2136_p12, %p2135_p11 }
  0x1f   : > { %s2974_s13 = scalar_select %p2532_p6, 1, 0 }
  0x20   : > { %p2943_p7 = pneg %p2532_p6 }
  0x22   : > { %p2130_p9 = pnand %p2128_p8, %p2943_p7 }
  0x24   : > { %p2131_p10 = pneg %p2130_p9 }
  0x26   : > { %p2138_p0 = pnand %p2137_p13, %p2131_p10 }
  0x28   : > { %2141 = shalt.err (!%p2138_p0)
}
  0x29   : > { %s2944_s15 = smov 128   ;;  %s2946_s16 = smov 8  }
  0x2a   : > { %s2975_s3 = sld [smem:[#allocation31_spill]]  ;;  %s2153_s19 = scalar_lea.vmem %s385_s30, 512 }
  0x2b   : > { %p2154_p2 = scmp.ne.s32.totalorder %s385_s30, %s2153_s19  ;;  %p2161_p9 = scmp.lt.s32.totalorder %s385_s30, %s385_s30 }
  0x2c   : > { %p2162_p10 = scmp.lt.s32.totalorder %s2153_s19, %s2153_s19 }
  0x2d   : > { %p2156_p5 = pnand %p2154_p2, %p2943_p7 }
  0x2e   : > { %p2163_p11 = por %p2162_p10, %p2161_p9 }
  0x2f   : > { %p2157_p8 = pneg %p2156_p5 }
  0x30   : > { %2016 = dma.hbm_to_vmem [thread:$0]  (!%p2532_p6), %s2975_s3, 512, %s353_s26, [#allocation10], %s2944_s15, %s2944_s15, %s2946_s16  }
  0x31   : > { %p2164_p12 = pnand %p2163_p11, %p2157_p8 }
  0x33   : > { %2167 = shalt.err (!%p2164_p12)
}
  0x34   : > { %s2976_s7 = sld [smem:[#allocation32_spill]]  ;;  %s1813_s26 = sadd.s32 4294967294, %s2410_s24  }
  0x35   : > { %s2562_s29 = sadd.s32 1, %s2410_s24   ;;  %s44_s17 = sadd.s32 1, %s2406_s23 }
  0x36   : > { %2977 = sst [smem:[#allocation26_spill]] %s2562_s29  ;;  %s41_s14 = ssub.s32 %s2410_s24, %s2562_s29 }
  0x37   : > { %p42_p13 = scmp.eq.s32.totalorder %s41_s14, 0  ;;  %p51_p0 = scmp.ne.s32.totalorder %s2406_s23, %s2402_s22 }
  0x38   : > { %p52_p2 = scmp.eq.s32.totalorder %s2410_s24, 0  ;;  %p57_p5 = scmp.ne.s32.totalorder %s2402_s22, %s2398_s21 }
  0x39   : > { %s2573_s18 = scalar_select %p42_p13, %s2406_s23, %s44_s17  }
  0x3a   : > { %2022 = dma.hbm_to_vmem [thread:$0]  (!%p2532_p6), %s2976_s7, 512, %s385_s30, [#allocation13], %s2944_s15, %s2944_s15, %s2946_s16  }
  0x3b   : > { %2978 = sst [smem:[#allocation27_spill]] %s2573_s18  ;;  %p53_p8 = por %p52_p2, %p51_p0 }
  0x3c   : > { %p2577_p9 = por %p2956_p1, %p57_p5  ;;  %p301_p10 = scmp.eq.s32.totalorder %s2518_s27, 1 }
  0x3d   : > { %p307_p11 = scmp.eq.s32.totalorder %s1813_s26, 1  ;;  %p2047_p12 = scmp.lt.s32.totalorder %s2410_s24, 2 }
  0x3e   : > { %s2979_s19 = scalar_select %p2577_p9, 1, 0 }
  0x3f   : > { %s2948_s30 = sand.u32 1, %s2406_s23   ;;  %p2584_p4 = por %p301_p10, %p51_p0 }
  0x40   : > { %p2588_p7 = por %p307_p11, %p57_p5  ;;  %s2594_s14 = sshll.u32 %s2948_s30, 3 }
  0x41   : > { %s2980_s20 = scalar_select %p2584_p4, 1, 0 }
  0x42   : > { %s2981_s25 = scalar_select %p2588_p7, 1, 0 }
  0x43   : > { %s2597_s17 = sshll.u32 %s2410_s24, 7  ;;  %p2599_p13 = pnand %p2047_p12, %p53_p8 }
  0x44   : > { %2982 = sst [smem:[#allocation28_spill]] %s2981_s25  ;;  %s435_s26 = sand.u32 1, %s2410_s24  }
  0x45   : > { %s2984_s1 = sld [smem:[#allocation30_spill]]  ;;  %s439_s30 = scalar_lea.vmem [#allocation6], %s2594_s14 }
  0x46   : > { %s446_s18 = sshll.u32 %s439_s30, 4  ;;  %s2416_s29 = smov [#allocation11]   ;;  %s2611_s18 = int_to_ptr.vmem [resolvable:$true] %s446_s18 }
  0x47   : > { %s368_s25 = sshll.u32 %s2416_s29, 4  ;;  %s2613_s21 = scalar_lea.sflag [#allocation7], %s435_s26  ;;  %s369_s25 = int_to_ptr.vmem [resolvable:$true] %s368_s25 }
  0x48   : > { %p2619_p2 = pneg %p2599_p13 }
  0x4a   : > { %s2985_s24 = scalar_select %p2619_p2, 1, 0 }
  0x4b   : > { %s2608_s7 = scalar_lea.hbm %s2984_s1, %s2597_s17  ;;  %s2173_s30 = scalar_lea.hbm %s2984_s1, 256 }
  0x4c   : > { %s2168_s11 = scalar_lea.hbm %s2608_s7, 128  ;;  %p2174_p10 = scmp.lt.s32.totalorder %s2608_s7, %s2984_s1 }
  0x4d   : > { %p2169_p0 = scmp.ne.s32.totalorder %s2608_s7, %s2168_s11  ;;  %p2175_p11 = scmp.lt.s32.totalorder %s2173_s30, %s2168_s11 }
  0x4f   : > { %p2171_p5 = pnand %p2619_p2, %p2169_p0  ;;  %p2176_p12 = por %p2175_p11, %p2174_p10 }
  0x51   : > { %p2172_p8 = pneg %p2171_p5 }
  0x53   : > { %p2177_p1 = pnand %p2176_p12, %p2172_p8 }
  0x55   : > { %2180 = shalt.err (!%p2177_p1)
}
  0x56   : > { %s2181_s29 = scalar_lea.vmem %s2611_s18, 128  ;;  %s2417_s26 = smov [#allocation6]  }
  0x57   : > { %p2182_p7 = scmp.ne.s32.totalorder %s2611_s18, %s2181_s29  ;;  %s2186_s3 = sshll.u32 %s2417_s26, 4  ;;  %s2187_s3 = int_to_ptr.vmem [resolvable:$false] %s2186_s3 }
  0x58   : > { %s2188_s16 = scalar_lea.vmem %s2187_s3, 256  ;;  %p2189_p4 = scmp.lt.s32.totalorder %s2611_s18, %s2187_s3 }
  0x59   : > { %p2184_p0 = pnand %p2182_p7, %p2619_p2  ;;  %p2190_p9 = scmp.lt.s32.totalorder %s2188_s16, %s2181_s29 }
  0x5b   : > { %p2185_p5 = pneg %p2184_p0  ;;  %p2191_p3 = por %p2190_p9, %p2189_p4 }
  0x5d   : > { %p2192_p6 = pnand %p2191_p3, %p2185_p5 }
  0x5f   : > { %2195 = shalt.err (!%p2192_p6)
}
  0x60   : > { %2032 = dma.hbm_to_vmem [thread:$0]  (!%p2599_p13), %s2608_s7, 128, %s2611_s18, %s2613_s21  }
  0x61   : > { %s2207_s10 = scalar_lea.vmem %s369_s25, 512  ;;  %p2986_p7 = scmp.ne.s32.totalorder %s2974_s13, 0 }
  0x62   : > { %p2208_p1 = scmp.ne.s32.totalorder %s369_s25, %s2207_s10  ;;  %p2215_p12 = scmp.lt.s32.totalorder %s369_s25, %s369_s25 }
  0x63   : > { %p2987_p8 = pneg %p2986_p7  ;;  %p2216_p0 = scmp.lt.s32.totalorder %s2207_s10, %s2207_s10 }
  0x65   : > { %p2210_p10 = pnand %p2208_p1, %p2987_p8  ;;  %p2217_p2 = por %p2216_p0, %p2215_p12 }
  0x67   : > { %p2211_p11 = pneg %p2210_p10 }
  0x69   : > { %p2218_p4 = pnand %p2217_p2, %p2211_p11 }
  0x6b   : > { %2221 = shalt.err (!%p2218_p4)
}
  0x6c   : > { %s2988_s11 = smov 8   ;;  %s2989_s12 = smov 128  }
  0x6d   : > { %2019 = dma.hbm_to_vmem [thread:$0]  (!%p2986_p7), %s2935_s5, 512, %s369_s25, [#allocation10], %s2989_s12, %s2989_s12, %s2988_s11  }
  0x6e   : > { %s2418_s7 = smov [#allocation14]   ;;  %p2990_p6 = pmov %p2987_p8 }
  0x6f   : > { %s400_s18 = sshll.u32 %s2418_s7, 4  ;;  %s401_s18 = int_to_ptr.vmem [resolvable:$true] %s400_s18 }
  0x70   : > { %s2233_s26 = scalar_lea.vmem %s401_s18, 512  ;;  %p2241_p5 = scmp.lt.s32.totalorder %s401_s18, %s401_s18 }
  0x71   : > { %p2234_p3 = scmp.ne.s32.totalorder %s401_s18, %s2233_s26  ;;  %p2242_p1 = scmp.lt.s32.totalorder %s2233_s26, %s2233_s26 }
  0x73   : > { %p2236_p9 = pnand %p2234_p3, %p2990_p6  ;;  %p2243_p8 = por %p2242_p1, %p2241_p5 }
  0x75   : > { %p2237_p2 = pneg %p2236_p9 }
  0x77   : > { %p2244_p10 = pnand %p2243_p8, %p2237_p2 }
  0x79   : > { %2247 = shalt.err (!%p2244_p10)
}
  0x7a   : > { %2025 = dma.hbm_to_vmem [thread:$0]  (!%p2986_p7), %s2939_s9, 512, %s401_s18, [#allocation13], %s2989_s12, %s2989_s12, %s2988_s11  }
  0x7b   : > { %s2991_s0 = sld [smem:[#allocation29_spill]]  ;;  %s421_s13 = scalar_lea.vmem [#allocation3], %s2594_s14 }
  0x7c   : > { %s428_s29 = sshll.u32 %s421_s13, 4  ;;  %s2992_s7 = sand.u32 1, %s2406_s23   ;;  %s429_s29 = int_to_ptr.vmem [resolvable:$true] %s428_s29 }
  0x7d   : > { %s418_s26 = scalar_lea.sflag [#allocation4], %s2992_s7  ;;  %p2993_p12 = scmp.ne.s32.totalorder %s2985_s24, 0 }
  0x81   : > { %s2668_s30 = scalar_lea.hbm %s2991_s0, %s2597_s17  ;;  %s2253_s12 = scalar_lea.hbm %s2991_s0, 256 }
  0x82   : > { %s2248_s1 = scalar_lea.hbm %s2668_s30, 128  ;;  %p2254_p7 = scmp.lt.s32.totalorder %s2668_s30, %s2991_s0 }
  0x83   : > { %p2249_p11 = scmp.ne.s32.totalorder %s2668_s30, %s2248_s1  ;;  %p2255_p3 = scmp.lt.s32.totalorder %s2253_s12, %s2248_s1 }
  0x85   : > { %p2251_p0 = pnand %p2249_p11, %p2993_p12  ;;  %p2256_p6 = por %p2255_p3, %p2254_p7 }
  0x87   : > { %p2252_p4 = pneg %p2251_p0 }
  0x89   : > { %p2257_p9 = pnand %p2256_p6, %p2252_p4 }
  0x8b   : > { %2260 = shalt.err (!%p2257_p9)
}
  0x8c   : > { %s2261_s16 = scalar_lea.vmem %s429_s29, 128  ;;  %s2419_s10 = smov [#allocation3]  }
  0x8d   : > { %p2262_p2 = scmp.ne.s32.totalorder %s429_s29, %s2261_s16  ;;  %s2266_s13 = sshll.u32 %s2419_s10, 4  ;;  %s2267_s13 = int_to_ptr.vmem [resolvable:$false] %s2266_s13 }
  0x8e   : > { %s2268_s7 = scalar_lea.vmem %s2267_s13, 256  ;;  %p2269_p8 = scmp.lt.s32.totalorder %s429_s29, %s2267_s13 }
  0x8f   : > { %p2264_p5 = pnand %p2262_p2, %p2993_p12  ;;  %p2270_p10 = scmp.lt.s32.totalorder %s2268_s7, %s2261_s16 }
  0x91   : > { %p2265_p1 = pneg %p2264_p5  ;;  %p2271_p11 = por %p2270_p10, %p2269_p8 }
  0x93   : > { %p2272_p0 = pnand %p2271_p11, %p2265_p1 }
  0x95   : > { %2275 = shalt.err (!%p2272_p0)
}
  0x96   : > { %2029 = dma.hbm_to_vmem [thread:$0]  (!%p2599_p13), %s2668_s30, 128, %s429_s29, %s418_s26  }
  0x97   : > { %s462_s11 = scalar_lea.hbm %s2932_s2, %s2597_s17  ;;  %s457_s12 = scalar_lea.vmem [#allocation8], %s2594_s14 }
  0x98   : > { %s464_s18 = sshll.u32 %s457_s12, 4  ;;  %s2276_s3 = scalar_lea.hbm %s462_s11, 128  ;;  %s465_s18 = int_to_ptr.vmem [resolvable:$true] %s464_s18 }
  0x99   : > { %p2277_p4 = scmp.ne.s32.totalorder %s462_s11, %s2276_s3  ;;  %s2281_s13 = scalar_lea.hbm %s2932_s2, 256 }
  0x9a   : > { %p2282_p6 = scmp.lt.s32.totalorder %s462_s11, %s2932_s2  ;;  %p2283_p9 = scmp.lt.s32.totalorder %s2281_s13, %s2276_s3 }
  0x9b   : > { %p2279_p7 = pnand %p2277_p4, %p2993_p12 }
  0x9c   : > { %p2284_p2 = por %p2283_p9, %p2282_p6 }
  0x9d   : > { %p2280_p3 = pneg %p2279_p7 }
  0x9f   : > { %p2285_p5 = pnand %p2284_p2, %p2280_p3 }
  0xa1   : > { %2288 = shalt.err (!%p2285_p5)
}
  0xa2   : > { %s2289_s14 = scalar_lea.vmem %s465_s18, 128  ;;  %s2420_s17 = smov [#allocation8]  }
  0xa3   : > { %p2290_p1 = scmp.ne.s32.totalorder %s465_s18, %s2289_s14  ;;  %s2294_s30 = sshll.u32 %s2420_s17, 4  ;;  %s2295_s30 = int_to_ptr.vmem [resolvable:$false] %s2294_s30 }
  0xa4   : > { %s2296_s29 = scalar_lea.vmem %s2295_s30, 256  ;;  %p2297_p11 = scmp.lt.s32.totalorder %s465_s18, %s2295_s30 }
  0xa5   : > { %p2292_p8 = pnand %p2290_p1, %p2993_p12  ;;  %p2298_p0 = scmp.lt.s32.totalorder %s2296_s29, %s2289_s14 }
  0xa7   : > { %p2293_p10 = pneg %p2292_p8  ;;  %p2299_p4 = por %p2298_p0, %p2297_p11 }
  0xa9   : > { %p2300_p7 = pnand %p2299_p4, %p2293_p10 }
  0xab   : > { %2303 = shalt.err (!%p2300_p7)
}
  0xac   : > { %2035 = dma.hbm_to_vmem [thread:$0]  (!%p2599_p13), %s462_s11, 128, %s465_s18, %s2613_s21  }
  0xad   : > { %p2994_p3 = scmp.ne.s32.totalorder %s2973_s28, 0 }
  0xae   : > { %s2710_s0 = sand.u32 (!%p2994_p3), 1, %s2402_s22   ;;  %p2995_p12 = scmp.ne.s32.totalorder (!%p2994_p3), %s2979_s19, 0 }
  0xaf   : > { %473 = sbr.rel (%p2994_p3) target bundleno = 2002 (0x7d2), region = 64  ;;  %s2713_s24 = sshll.u32 (!%p2994_p3), %s2710_s0, 3 }
  0xb0   : > { %s476_s26 = scalar_lea.sflag (!%p2994_p3), [#allocation4], %s2710_s0  ;;  %s479_s1 = scalar_lea.vmem (!%p2994_p3), [#allocation3], %s2713_s24 }
  0xb4   : > { %2373 = dma.done.wait (%p2995_p12), %s476_s26, 128  }
  0xb5   : > { %2375 = vsyncadd (%p2995_p12), %s476_s26, 4294967168  ;;  %s484_s21 = sand.u32 1, %s2518_s27   ;;  %s488_s15 = scalar_lea.vmem [#allocation6], %s2713_s24 }
  0xb6   : > { %s485_s28 = scalar_lea.sflag [#allocation7], %s484_s21 }
  0xb7   : > { %2377 = dma.done.wait (%p2995_p12), %s485_s28, 256  }
  0xb8   : > { %2379 = vsyncadd (%p2995_p12), %s485_s28, 4294967040  ;;  %s497_s25 = scalar_lea.vmem [#allocation8], %s2713_s24  ;;  %p2996_p13 = scmp.eq.s32.totalorder %s2518_s27, 0 }
  0xba   : > { %2381 = dma.done.wait (%p2996_p13), [#allocation10], 1024   ;;  %p2997_p6 = pmov %p2996_p13 }
  0xbc   : > { %2383 = vsyncadd (%p2997_p6), [#allocation10], 4294966272  ;;  %p2998_p9 = pmov %p2997_p6 }
  0xbd   : > { %p2999_p2 = pmov %p2997_p6 }
  0xbe   : > { %2385 = dma.done.wait (%p2998_p9), [#allocation13], 1024  }
  0xbf   : > { %2387 = vsyncadd (%p2999_p2), [#allocation13], 4294966272  ;;  %v2421_v0 = vmov 0.0   ;;  %vm2422_vm0 = vmmov 0   ;;  %v575_v1 = vld [vmem:[#allocation9 + $0x18] sm:$0xff]  ;;  %v574_v3 = vld [vmem:[#allocation9 + $0x10] sm:$0xff] }
  0xc0   : > { %1903 = vmatprep.subr.mxu0 %v2421_v0  ;;  %1914 = vmatprep.subr.mxu1 %v2421_v0  ;;  %v661_v2 = vld [vmem:[#allocation11 + $0x18] sm:$0xff]  ;;  %v660_v4 = vld [vmem:[#allocation11 + $0x10] sm:$0xff]  ;;  %v573_v5 = vld [vmem:[#allocation9 + $0x8] sm:$0xff]  ;;  %vm583_vm1 = vcmask 261120   ;;  %vm826_vm2 = vcmask 64512   ;;  %s2423_s3 = smov 120  }
  0xc1   : > { %1911 = vmatprep.mubr.msk.f32.mxu0 %vm2422_vm0, %v2421_v0  ;;  %1922 = vmatprep.mubr.msk.f32.mxu1 %vm2422_vm0, %v2421_v0  ;;  %v659_v6 = vld [vmem:[#allocation11 + $0x8] sm:$0xff]  ;;  %v572_v7 = vld [vmem:[#allocation9] sm:$0xff]  ;;  %v569_v9 = vld [vmem:[%s479_s1] sm:$0xff]  ;;  %s2424_s16 = smov 112   ;;  %s2425_s10 = smov 104   ;;  %vm1161_vm3 = vcmask 130112  }
  0xc2   : > { %1904 = vmatpush3.msra.mxu0 %v575_v1  ;;  %1915 = vmatpush3.msra.mxu1 %v661_v2  ;;  %v658_v8 = vld [vmem:[#allocation11] sm:$0xff]  ;;  %v1836_v11 = vld [vmem:[%s2934_s4] ss:$0 sm:$0xff]  ;;  %v745_v20 = vld [vmem:[#allocation12 + $0x18] sm:$0xff]  ;;  %s1835_s14 = sshll.u32 %s2710_s0, 5  ;;  %s2426_s30 = smov 8  }
  0xc3   : > { %1905 = vmatprep.subr.mxu0 %v2421_v0  ;;  %1916 = vmatprep.subr.mxu1 %v2421_v0  ;;  %v570_v10 = vld [vmem:[%s488_s15] sm:$0xff]  ;;  %v744_v21 = vld [vmem:[#allocation12 + $0x10] sm:$0xff]  ;;  %s2806_s17 = scalar_lea.vmem [#allocation16], %s1835_s14  ;;  %s2427_s29 = smov 16   ;;  %vm1334_vm4 = vcmask 195712   ;;  %vm1507_vm5 = vcmask 261312  }
  0xc4   : > { %1906 = vmatpush3.msra.mxu0 %v574_v3  ;;  %1917 = vmatpush3.msra.mxu1 %v660_v4  ;;  %v1838_v12 = vld [vmem:[%s2936_s6] ss:$0 sm:$0xff]  ;;  %v742_v23 = vld [vmem:[#allocation12] sm:$0xff]  ;;  %v571_v24 = vld [vmem:[%s497_s25] sm:$0xff]  ;;  %s2428_s26 = smov 24   ;;  %s1866_s1 = sshll.u32 %s2518_s27, 9 }
  0xc5   : > { %1907 = vmatprep.subr.mxu0 %v2421_v0  ;;  %1918 = vmatprep.subr.mxu1 %v2421_v0  ;;  %v743_v22 = vld [vmem:[#allocation12 + $0x8] sm:$0xff]  ;;  %s1627_s21 = sshll.u32 %s2806_s17, 4  ;;  %s3000_s25 = sld [smem:[#allocation35_spill]]  ;;  %s2858_s21 = int_to_ptr.vmem [resolvable:$true] %s1627_s21 }
  0xc6   : > { %1908 = vmatpush3.msra.mxu0 %v573_v5  ;;  %1919 = vmatpush3.msra.mxu1 %v659_v6  ;;  %v1840_v33 = vld [vmem:[%s2938_s8] ss:$0 sm:$0xff]  ;;  %s1601_s11 = scalar_lea.sflag [#allocation17], %s2710_s0  ;;  %s2304_s12 = scalar_lea.vmem %s2858_s21, 512 }
  0xc7   : > { %1909 = vmatprep.subr.mxu0 %v2421_v0  ;;  %1920 = vmatprep.subr.mxu1 %v2421_v0  ;;  %p2305_p5 = scmp.ne.s32.totalorder %s2858_s21, %s2304_s12  ;;  %p3001_p1 = scmp.ne.s32.totalorder %s2980_s20, 0 }
  0xc8   : > { %1910 = vmatpush3.msra.mxu0 %v572_v7  ;;  %1921 = vmatpush3.msra.mxu1 %v658_v8  ;;  %s2429_s18 = smov [#allocation16]  }
  0xc9   : > { %1912 = vmatmul.mubr.msk.f32.vlgmr.msra.gmra.mxu0 %vm583_vm1, %v569_v9  ;;  %1923 = vmatmul.mubr.msk.f32.vlgmr.msra.gmra.mxu1 %vm583_vm1, %v570_v10  ;;  %p2306_p8 = pnand %p2305_p5, %p3001_p1 }
  0xca   : > { %1936 = vmatprep.subr.mxu1 %v2421_v0  ;;  %1938 = vmatprep.mubr.msk.f32.mxu1 %vm2422_vm0, %v2421_v0 }
  0xcb   : > { %1925 = vmatprep.subr.mxu0 %v2421_v0  ;;  %1933 = vmatprep.mubr.msk.f32.mxu0 %vm2422_vm0, %v2421_v0  ;;  %s2856_s19 = scalar_lea.hbm %s3000_s25, %s1866_s1  ;;  %p2307_p10 = pneg %p2306_p8 }
  0xcc   : > { %1926 = vmatpush3.msra.mxu0 %v745_v20 }
  0xcd   : > { %1927 = vmatprep.subr.mxu0 %v2421_v0 }
  0xce   : > { %1928 = vmatpush3.msra.mxu0 %v744_v21  ;;  %v1513_v21 = vld [vmem:[#allocation14 + $0x18] sm:$0xff] }
  0xcf   : > { %1929 = vmatprep.subr.mxu0 %v2421_v0 }
  0xd0   : > { %1930 = vmatpush3.msra.mxu0 %v743_v22  ;;  %v1512_v22 = vld [vmem:[#allocation14 + $0x10] sm:$0xff] }
  0xd1   : > { %1931 = vmatprep.subr.mxu0 %v2421_v0 }
  0xd2   : > { %1932 = vmatpush3.msra.mxu0 %v742_v23  ;;  %v1511_v23 = vld [vmem:[#allocation14 + $0x8] sm:$0xff] }
  0xd3   : > { %1934 = vmatmul.mubr.msk.f32.vlgmr.msra.gmra.mxu0 %vm583_vm1, %v571_v24  ;;  %1956 = vmatprep.subr.mxu0 %v2421_v0 }
  0xd4   : > { %1958 = vmatprep.mubr.msk.f32.mxu0 %vm2422_vm0, %v2421_v0 }
 0x189   : > { %v653_v13 = vpop.f32.mrf.mxu0  ;;  %v738_v14 = vpop.f32.mrf.mxu1 }
 0x18a   : > { %v654_v15 = vadd.f32 %v1836_v11, %v653_v13  ;;  %v739_v16 = vadd.f32 %v1838_v12, %v738_v14 }
 0x18b   : > { %v1913_v17 = vpop.f32.mrf.mxu0  ;;  %v1924_v18 = vpop.f32.mrf.mxu1 }
 0x18c   : > { %v657_v19 = vmul.f32 0.35355338, %v654_v15  ;;  %991 = vrot.lane.b32.xlu1 %v739_v16, %s2423_s3  ;;  %1937 = vmatpush3.xpose.msk.msra.mxu1 %vm826_vm2, %v739_v16 }
 0x18d   : > { %1941 = vmatprep.subr.mxu1 %v2421_v0 }
 0x18f   : > { %1939 = vmatmul.mubr.msk.f32.vlgmr.msra.gmra.mxu1 %vm826_vm2, %v657_v19 }
 0x190   : > { %989 = vrot.lane.b32.xlu1 %v657_v19, %s2423_s3  ;;  %1943 = vmatprep.mubr.msk.f32.mxu1 %vm2422_vm0, %v2421_v0 }
 0x193   : > { %v822_v34 = vpop.f32.mrf.mxu0 }
 0x194   : > { %1163 = vrot.lane.b32.xlu1 %v657_v19, %s2424_s16  ;;  %v2790_v35 = vadd.f32 %v1840_v33, %v822_v34 }
 0x195   : > { %v1935_v36 = vpop.f32.mrf.mxu0 }
 0x196   : > { %1942 = vmatpush3.msra.mxu1 %v2790_v35 }
 0x197   : > { %1946 = vmatprep.subr.mxu1 %v2421_v0 }
 0x198   : > { %1338 = vrot.lane.b32.xlu1 %v739_v16, %s2425_s10 }
 0x19c   : > { %1336 = vrot.lane.b32.xlu1 %v657_v19, %s2425_s10 }
 0x1fe   : > { %v992_v37 = vpop.permute.xlu1 %991 }
 0x202   : > { %v990_v38 = vpop.permute.xlu1 %989 }
 0x206   : > { %v1164_v39 = vpop.permute.xlu1 %1163 }
 0x20a   : > { %v1339_v42 = vpop.permute.xlu1 %1338 }
 0x20e   : > { %v1337_v43 = vpop.permute.xlu1 %1336 }
 0x24f   : > { %v899_v25 = vpop.f32.mrf.mxu1 }
 0x250   : > { %v903_v26 = vsel %vm826_vm2, %v899_v25, -inf }
 0x251   : > { %904 = vmax.xlane.f32.xlu0 %v903_v26  ;;  %v1940_v27 = vpop.f32.mrf.mxu1 }
 0x2da   : > { %v905_v28 = vpop.xlane.xlu0 %904 }
 0x2db   : > { %v906_v29 = vsub.f32 %v899_v25, %v905_v28  ;;  %v1510_v25 = vld [vmem:[#allocation14] sm:$0xff] }
 0x2dd   : > { %v907_v30 = vmul.f32 1.442695, %v906_v29 }
 0x2df   : > { %2100 = vpow2.f32 %v907_v30 }
 0x2ec   : > { %v2101_v31 = vpop.eup %2100 }
 0x2ed   : > { %v909_v32 = vsel %vm826_vm2, %v2101_v31, 0.0 }
 0x2ee   : > { %910 = vadd.xlane.f32.xlu0 %v909_v32 }
 0x304   : > { %1165 = vrot.lane.b32.xlu0 %v739_v16, %s2424_s16 }
 0x377   : > { %v911_v40 = vpop.xlane.xlu0 %910 }
 0x378   : > { %2102 = vrcp.f32 %v911_v40 }
 0x37b   : > { %v1166_v41 = vpop.permute.xlu0 %1165 }
 0x37c   : > { %1957 = vmatpush3.xpose.msk.msra.mxu0 %vm826_vm2, %v1166_v41 }
 0x37d   : > { %1966 = vmatprep.subr.mxu0 %v2421_v0 }
 0x37f   : > { %1959 = vmatmul.mubr.msk.f32.vlgmr.msra.gmra.mxu0 %vm826_vm2, %v1164_v39 }
 0x380   : > { %1967 = vmatpush3.xpose.msk.msra.mxu0 %vm826_vm2, %v1339_v42  ;;  %1968 = vmatprep.mubr.msk.f32.mxu0 %vm2422_vm0, %v2421_v0 }
 0x381   : > { %1976 = vmatprep.subr.mxu0 %v2421_v0 }
 0x383   : > { %1969 = vmatmul.mubr.msk.f32.vlgmr.msra.gmra.mxu0 %vm826_vm2, %v1337_v43 }
 0x384   : > { %1984 = vmatprep.mubr.msk.f32.mxu0 %vm2422_vm0, %v2421_v0  ;;  %1977 = vmatpush3.msra.mxu0 %v1513_v21 }
 0x385   : > { %v2103_v44 = vpop.eup %2102  ;;  %1978 = vmatprep.subr.mxu0 %v2421_v0 }
 0x386   : > { %v913_v45 = vmul.f32 %v2103_v44, %v2101_v31  ;;  %1979 = vmatpush3.msra.mxu0 %v1512_v22 }
 0x387   : > { %1980 = vmatprep.subr.mxu0 %v2421_v0 }
 0x388   : > { %914 = vst.msk [vmem:[%s2806_s17] sm:$0xff] %vm826_vm2, %v913_v45  ;;  %1944 = vmatmul.mubr.msk.f32.vlgmr.msra.gmra.mxu1 %vm826_vm2, %v913_v45  ;;  %1981 = vmatpush3.msra.mxu0 %v1511_v23 }
 0x389   : > { %1947 = vmatpush3.xpose.msk.msra.mxu1 %vm826_vm2, %v992_v37  ;;  %1948 = vmatprep.mubr.msk.f32.mxu1 %vm2422_vm0, %v2421_v0 }
 0x38a   : > { %1951 = vmatprep.subr.mxu1 %v2421_v0  ;;  %1982 = vmatprep.subr.mxu0 %v2421_v0 }
 0x38b   : > { %1983 = vmatpush3.msra.mxu0 %v1510_v25 }
 0x38c   : > { %1949 = vmatmul.mubr.msk.f32.vlgmr.msra.gmra.mxu1 %vm826_vm2, %v990_v38 }
 0x38d   : > { %1953 = vmatprep.mubr.msk.f32.mxu1 %vm2422_vm0, %v2421_v0 }
 0x43f   : > { %v1237_v46 = vpop.f32.mrf.mxu0 }
 0x440   : > { %v1241_v47 = vsel %vm826_vm2, %v1237_v46, -inf }
 0x441   : > { %1242 = vmax.xlane.f32.xlu0 %v1241_v47  ;;  %v1960_v48 = vpop.f32.mrf.mxu0 }
 0x443   : > { %v1410_v49 = vpop.f32.mrf.mxu0 }
 0x444   : > { %v1414_v56 = vsel %vm826_vm2, %v1410_v49, -inf }
 0x445   : > { %v1970_v50 = vpop.f32.mrf.mxu0 }
 0x448   : > { %v984_v51 = vpop.f32.mrf.mxu1 }
 0x449   : > { %988 = vst.msk [vmem:[#allocation2] sm:$0xff] %vm826_vm2, %v984_v51 }
 0x44a   : > { %v1945_v52 = vpop.f32.mrf.mxu1 }
 0x44c   : > { %v1063_v53 = vpop.f32.mrf.mxu1 }
 0x44d   : > { %v1067_v54 = vsel %vm826_vm2, %v1063_v53, -inf }
 0x44e   : > { %1068 = vmax.xlane.f32.xlu1 %v1067_v54  ;;  %v1950_v55 = vpop.f32.mrf.mxu1 }
 0x452   : > { %1415 = vmax.xlane.f32.xlu1 %v1414_v56 }
 0x4ca   : > { %v1243_v57 = vpop.xlane.xlu0 %1242 }
 0x4cb   : > { %v1244_v58 = vsub.f32 %v1237_v46, %v1243_v57 }
 0x4cd   : > { %v1245_v59 = vmul.f32 1.442695, %v1244_v58 }
 0x4cf   : > { %2104 = vpow2.f32 %v1245_v59 }
 0x4d7   : > { %v1069_v60 = vpop.xlane.xlu1 %1068 }
 0x4d8   : > { %v1070_v5 = vsub.f32 %v1063_v53, %v1069_v60 }
 0x4da   : > { %v1071_v6 = vmul.f32 1.442695, %v1070_v5 }
 0x4db   : > { %v1416_v61 = vpop.xlane.xlu1 %1415 }
 0x4dc   : > { %v2105_v62 = vpop.eup %2104  ;;  %v1417_v63 = vsub.f32 %v1410_v49, %v1416_v61 }
 0x4dd   : > { %v1247_v1 = vsel %vm826_vm2, %v2105_v62, 0.0 }
 0x4de   : > { %v1418_v2 = vmul.f32 1.442695, %v1417_v63  ;;  %1248 = vadd.xlane.f32.xlu0 %v1247_v1 }
 0x4e0   : > { %2106 = vpow2.f32 %v1418_v2 }
 0x4e1   : > { %2108 = vpow2.f32 %v1071_v6 }
 0x4ed   : > { %v2107_v3 = vpop.eup %2106 }
 0x4ee   : > { %v1420_v4 = vsel %vm826_vm2, %v2107_v3, 0.0  ;;  %v2109_v7 = vpop.eup %2108 }
 0x4ef   : > { %1421 = vadd.xlane.f32.xlu1 %v1420_v4  ;;  %v1073_v8 = vsel %vm826_vm2, %v2109_v7, 0.0 }
 0x4f4   : > { %1081 = vrot.lane.b32.xlu0 %v2790_v35, %s2423_s3  ;;  %s2308_s3 = sshll.u32 %s2429_s18, 4  ;;  %s2309_s3 = int_to_ptr.vmem [resolvable:$false] %s2308_s3 }
 0x4f5   : > { %p2311_p11 = scmp.lt.s32.totalorder %s2858_s21, %s2309_s3 }
 0x500   : > { %1254 = vrot.lane.b32.xlu1 %v2790_v35, %s2424_s16  ;;  %s2310_s16 = scalar_lea.vmem %s2309_s3, 1024 }
 0x501   : > { %p2312_p0 = scmp.lt.s32.totalorder %s2310_s16, %s2304_s12 }
 0x503   : > { %p2313_p4 = por %p2312_p0, %p2311_p11 }
 0x505   : > { %p2314_p7 = pnand %p2313_p4, %p2307_p10 }
 0x524   : > { %1074 = vadd.xlane.f32.xlu1 %v1073_v8 }
 0x535   : > { %1427 = vrot.lane.b32.xlu1 %v2790_v35, %s2425_s10 }
 0x567   : > { %v1249_v9 = vpop.xlane.xlu0 %1248 }
 0x568   : > { %2110 = vrcp.f32 %v1249_v9 }
 0x56b   : > { %v1082_v10 = vpop.permute.xlu0 %1081 }
 0x56c   : > { %1952 = vmatpush3.msra.mxu1 %v1082_v10 }
 0x56d   : > { %1961 = vmatprep.subr.mxu1 %v2421_v0 }
 0x575   : > { %v2111_v11 = vpop.eup %2110 }
 0x576   : > { %v1251_v12 = vmul.f32 %v2111_v11, %v2105_v62 }
 0x578   : > { %v1422_v13 = vpop.xlane.xlu1 %1421  ;;  %1851 = vst.msk [vmem:[%s2806_s17 + $0x10] sm:$0xff] %vm826_vm2, %v1251_v12 }
 0x579   : > { %2112 = vrcp.f32 %v1422_v13 }
 0x57c   : > { %v1255_v16 = vpop.permute.xlu1 %1254 }
 0x586   : > { %v2113_v14 = vpop.eup %2112 }
 0x587   : > { %v1424_v15 = vmul.f32 %v2113_v14, %v2107_v3 }
 0x589   : > { %1855 = vst.msk [vmem:[%s2806_s17 + $0x18] sm:$0xff] %vm826_vm2, %v1424_v15 }
 0x5ad   : > { %v1075_v17 = vpop.xlane.xlu1 %1074 }
 0x5ae   : > { %2114 = vrcp.f32 %v1075_v17 }
 0x5b1   : > { %v1428_v20 = vpop.permute.xlu1 %1427 }
 0x5bb   : > { %v2115_v18 = vpop.eup %2114 }
 0x5bc   : > { %v1077_v19 = vmul.f32 %v2115_v18, %v2109_v7 }
 0x5be   : > { %1847 = vst.msk [vmem:[%s2806_s17 + $0x8] sm:$0xff] %vm826_vm2, %v1077_v19  ;;  %1954 = vmatmul.mubr.msk.f32.vlgmr.msra.gmra.mxu1 %vm826_vm2, %v1077_v19 }
 0x5bf   : > { %1962 = vmatpush3.msra.mxu1 %v1255_v16  ;;  %1963 = vmatprep.mubr.msk.f32.mxu1 %vm2422_vm0, %v2421_v0 }
 0x5c0   : > { %1971 = vmatprep.subr.mxu1 %v2421_v0 }
 0x5c2   : > { %1964 = vmatmul.mubr.msk.f32.vlgmr.msra.gmra.mxu1 %vm826_vm2, %v1251_v12 }
 0x5c3   : > { %1972 = vmatpush3.msra.mxu1 %v1428_v20  ;;  %1973 = vmatprep.mubr.msk.f32.mxu1 %vm2422_vm0, %v2421_v0 }
 0x5c6   : > { %1974 = vmatmul.mubr.msk.f32.vlgmr.msra.gmra.mxu1 %vm826_vm2, %v1424_v15 }
 0x67e   : > { %v1153_v24 = vpop.f32.mrf.mxu1 }
 0x67f   : > { %1158 = vrot.lane.b32.xlu0 %v1153_v24, %s2426_s30 }
 0x680   : > { %v1955_v26 = vpop.f32.mrf.mxu1 }
 0x682   : > { %v1326_v27 = vpop.f32.mrf.mxu1 }
 0x683   : > { %1331 = vrot.lane.b32.xlu1 %v1326_v27, %s2427_s29 }
 0x684   : > { %v1965_v28 = vpop.f32.mrf.mxu1 }
 0x686   : > { %v1499_v29 = vpop.f32.mrf.mxu1 }
 0x687   : > { %1504 = vrot.lane.b32.xlu0 %v1499_v29, %s2428_s26 }
 0x688   : > { %v1975_v30 = vpop.f32.mrf.mxu1 }
 0x6f1   : > { %v1159_v31 = vpop.permute.xlu0 %1158 }
 0x6f2   : > { %1162 = vst.msk [vmem:[#allocation2] sm:$0xff] %vm1161_vm3, %v1159_v31 }
 0x6f5   : > { %v1332_v32 = vpop.permute.xlu1 %1331 }
 0x6f6   : > { %1335 = vst.msk [vmem:[#allocation2] sm:$0xff] %vm1334_vm4, %v1332_v32 }
 0x6f9   : > { %v1505_v0 = vpop.permute.xlu0 %1504 }
 0x6fa   : > { %1508 = vst.msk [vmem:[#allocation2] sm:$0xff] %vm1507_vm5, %v1505_v0 }
 0x701   : > { %v1509_v33 = vld [vmem:[#allocation2] sm:$0xff] }
 0x702   : > { %1985 = vmatmul.mubr.msk.f32.vlgmr.msra.gmra.mxu0 %vm583_vm1, %v1509_v33 }
 0x703   : > { %2317 = shalt.err (!%p2314_p7)
}
 0x704   : > { %s2318_s10 = scalar_lea.hbm %s2856_s19, 512  ;;  %s2322_s14 = scalar_lea.hbm %s3000_s25, 1024 }
 0x705   : > { %p2319_p3 = scmp.ne.s32.totalorder %s2856_s19, %s2318_s10  ;;  %p2323_p6 = scmp.lt.s32.totalorder %s2856_s19, %s3000_s25 }
 0x706   : > { %p2324_p9 = scmp.lt.s32.totalorder %s2322_s14, %s2318_s10 }
 0x707   : > { %p2320_p12 = pnand %p2319_p3, %p3001_p1 }
 0x708   : > { %p2325_p2 = por %p2324_p9, %p2323_p6 }
 0x709   : > { %p2321_p13 = pneg %p2320_p12 }
 0x70b   : > { %p2326_p5 = pnand %p2325_p2, %p2321_p13 }
 0x70d   : > { %2329 = shalt.err (!%p2326_p5)
}
 0x70e   : > { %s2430_s26 = smov 128   ;;  %s3002_s15 = sld [smem:[#allocation33_spill]] }
 0x70f   : > { %2010 = dma.vmem_to_hbm [thread:$0]  (%p3001_p1), %s2858_s21, 512, %s2856_s19, %s1601_s11, %s2430_s26, %s2430_s26, %s2426_s30  }
 0x710   : > { %s1861_s12 = sshll.u32 %s2518_s27, 7  ;;  %s561_s18 = scalar_lea.vmem [#allocation15], %s2713_s24 }
 0x711   : > { %s1614_s3 = sshll.u32 %s561_s18, 4  ;;  %s3003_s13 = sld [smem:[#allocation34_spill]]  ;;  %s1615_s3 = int_to_ptr.vmem [resolvable:$true] %s1614_s3 }
 0x712   : > { %s1596_s14 = scalar_lea.sflag [#allocation5], %s2710_s0  ;;  %s2330_s30 = scalar_lea.vmem %s1615_s3, 128 }
 0x713   : > { %p2331_p8 = scmp.ne.s32.totalorder %s1615_s3, %s2330_s30  ;;  %s2431_s27 = smov [#allocation15]  }
 0x714   : > { %v1857_v34 = vld [vmem:[%s3002_s15] ss:$0 sm:$0xff]  ;;  %s2334_s24 = sshll.u32 %s2431_s27, 4  ;;  %s2335_s24 = int_to_ptr.vmem [resolvable:$false] %s2334_s24 }
 0x715   : > { %p2332_p10 = pnand %p2331_p8, %p3001_p1  ;;  %s2336_s21 = scalar_lea.vmem %s2335_s24, 256 }
 0x716   : > { %p2337_p0 = scmp.lt.s32.totalorder %s1615_s3, %s2335_s24  ;;  %p2338_p4 = scmp.lt.s32.totalorder %s2336_s21, %s2330_s30 }
 0x717   : > { %s2892_s7 = scalar_lea.hbm %s3003_s13, %s1861_s12  ;;  %p2333_p11 = pneg %p2332_p10 }
 0x718   : > { %p2339_p7 = por %p2338_p4, %p2337_p0 }
 0x71a   : > { %p2340_p3 = pnand %p2339_p7, %p2333_p11 }
 0x7c2   : > { %v1590_v35 = vpop.f32.mrf.mxu0 }
 0x7c3   : > { %v1591_v36 = vadd.f32 %v1857_v34, %v1590_v35 }
 0x7c4   : > { %v1986_v37 = vpop.f32.mrf.mxu0 }
 0x7c5   : > { %1594 = vst.msk [vmem:[%s561_s18] sm:$0xff] %vm583_vm1, %v1591_v36 }
 0x7c6   : > { %2343 = shalt.err (!%p2340_p3)
}
 0x7c7   : > { %s2344_s19 = scalar_lea.hbm %s2892_s7, 128  ;;  %s2348_s17 = scalar_lea.hbm %s3003_s13, 256 }
 0x7c8   : > { %p2345_p12 = scmp.ne.s32.totalorder %s2892_s7, %s2344_s19  ;;  %p2349_p9 = scmp.lt.s32.totalorder %s2892_s7, %s3003_s13 }
 0x7c9   : > { %p2350_p2 = scmp.lt.s32.totalorder %s2348_s17, %s2344_s19 }
 0x7ca   : > { %p2346_p13 = pnand %p2345_p12, %p3001_p1 }
 0x7cb   : > { %p2351_p5 = por %p2350_p2, %p2349_p9 }
 0x7cc   : > { %p2347_p6 = pneg %p2346_p13 }
 0x7ce   : > { %p2352_p8 = pnand %p2351_p5, %p2347_p6 }
 0x7d0   : > { %2355 = shalt.err (!%p2352_p8)
}
 0x7d1   : > { %2009 = dma.vmem_to_hbm [thread:$0]  (%p3001_p1), %s1615_s3, 128, %s2892_s7, %s1596_s14  }
 0x7d2 PF: > { %s3004_s1 = sld [smem:[#allocation24_spill]] }
 0x7d3   : > { %s3005_s28 = sld [smem:[#allocation28_spill]] }
 0x7d4   : > { %s3006_s15 = sld [smem:[#allocation25_spill]] }
 0x7d8   : > { %s1642_s12 = sand.u32 1, %s3004_s1  }
 0x7d9   : > { %p3007_p10 = scmp.ne.s32.totalorder %s3005_s28, 0  ;;  %s1643_s18 = scalar_lea.sflag [#allocation5], %s1642_s12 }
 0x7da   : > { %p3008_p11 = scmp.ge.s32.totalorder %s3006_s15, 2 }
 0x7dc   : > { %p2037_p0 = pnand %p3008_p11, %p3007_p10 }
 0x7de   : > { %p2038_p4 = pneg %p2037_p0 }
 0x7e0   : > { %2389 = dma.done.wait (%p2038_p4), %s1643_s18, 128  }
 0x7e1   : > { %2391 = vsyncadd (%p2038_p4), %s1643_s18, 4294967168  ;;  %s1652_s16 = scalar_lea.sflag [#allocation17], %s1642_s12 }
 0x7e2   : > { %2393 = dma.done.wait (%p2038_p4), %s1652_s16, 512  }
 0x7e3   : > { %2395 = vsyncadd (%p2038_p4), %s1652_s16, 4294966784  ;;  %s3009_s24 = sld [smem:[#allocation26_spill]]  ;;  %s3011_s21 = smov %s2402_s22 }
 0x7e4   : > { %s3010_s20 = sld [smem:[#allocation27_spill]]  ;;  %s3012_s22 = smov %s2406_s23 }
 0x7e9   : > { %p34_p1 = scmp.ge.s32.totalorder %s3009_s24, 4  }
 0x7ea   : > { %s3013_s23 = smov %s3010_s20 }
 0x7eb   :  { %36 = sbr.rel (!%p34_p1) target bundleno = 19 (0x13), region = 169 }
 0x7f0   :  { %1657 = vsyncpa [#allocation4], 1 }
 0x7f1   :  { %1659 = vsyncpa [#allocation4 + $0x1], 1 }
 0x7f2   :  { %1660 = vsyncpa [#allocation7], 1 }
 0x7f3   :  { %1662 = vsyncpa [#allocation7 + $0x1], 1 }
 0x7f4   :  { %1663 = vsyncpa [#allocation10], 1 }
 0x7f5   :  { %1664 = vsyncpa [#allocation13], 1 }
 0x7f6   :  { %1665 = vsyncpa [#allocation5], 1 }
 0x7f7   :  { %1667 = vsyncpa [#allocation5 + $0x1], 1 }
 0x7f8   :  { %1668 = vsyncpa [#allocation17], 1 }
 0x7f9   :  { %1670 = vsyncpa [#allocation17 + $0x1], 1 }

</bundles_post_ra>
